<compile_context>
chip_gen: v6e
topology: v6e:2x2x1
jax: 0.10.0
libtpu: 0.0.40
codegen_flags: <defaults>
</compile_context>

<pallas_src>
import functools

import jax
import jax.numpy as jnp
from jax.experimental import pallas as pl
from jax.experimental.pallas import tpu as pltpu

N_EMBED = 32
HIDDEN = 4 * N_EMBED  # 128
DROPOUT_P = 0.2


def _round_up(a, b):
    return (a + b - 1) // b * b


def _ffn_kernel(x_ref, w1_ref, b1_ref, w2_ref, b2_ref, *rest,
                keep_threshold, inv_keep, apply_dropout, compute_dtype):
    if apply_dropout:
        bits_ref, o_ref = rest
    else:
        (o_ref,) = rest

    # ---- hot path: two lane-dense matmuls + ReLU + dropout ----
    x = x_ref[...]                                                  # [TP, L] bf16
    h = jnp.dot(x, w1_ref[...], preferred_element_type=jnp.float32)  # [TP, LH] f32
    h = h + b1_ref[...]
    h = jnp.maximum(h, 0.0)                                          # ReLU (f32)
    y = jnp.dot(h.astype(compute_dtype), w2_ref[...],
                preferred_element_type=jnp.float32)                  # [TP, L] f32
    y = y + b2_ref[...]

    if apply_dropout:
        # Inverted dropout: keep with prob 1-p, scale by 1/(1-p).
        keep = bits_ref[...] >= jnp.uint32(keep_threshold)
        y = jnp.where(keep, y * jnp.float32(inv_keep), jnp.float32(0.0))

    o_ref[...] = y.astype(o_ref.dtype)


def feed_forward(x, w1, b1, w2, b2, *, key=None, p=DROPOUT_P, training=True,
                 compute_dtype=jnp.bfloat16):
    """x: [B, T, C] float32.  w1: [C, 4C], b1: [4C], w2: [4C, C], b2: [C].
    Returns [B, T, C] float32 (matches nn.Linear->ReLU->nn.Linear->Dropout)."""
    B, T, C = x.shape
    H = w1.shape[1]
    M = B * T

    # ---- lane-dense packing: fold PACK tokens into the 128-lane axis ----
    PACK = 128 // C if (C < 128 and 128 % C == 0) else 1
    L = PACK * C            # packed activation width (128 for C=32)
    LH = PACK * H           # packed hidden width (512 for H=128)

    P = -(-M // PACK)                               # packed rows needed
    TILE_P = min(256, _round_up(P, 8))              # 256 packed rows = 1024 tokens
    P_pad = _round_up(P, TILE_P)
    M_pad = P_pad * PACK

    x2d = x.reshape(M, C).astype(compute_dtype)
    if M_pad != M:
        x2d = jnp.pad(x2d, ((0, M_pad - M), (0, 0)))
    x_p = x2d.reshape(P_pad, L)

    # Block-diagonal weights make the packed matmuls exactly equivalent.
    eye = jnp.eye(PACK, dtype=jnp.float32)
    w1_bd = jnp.kron(eye, w1.astype(jnp.float32)).astype(compute_dtype)  # [L, LH]
    w2_bd = jnp.kron(eye, w2.astype(jnp.float32)).astype(compute_dtype)  # [LH, L]
    b1_bd = jnp.tile(b1.astype(jnp.float32), PACK).reshape(1, LH)
    b2_bd = jnp.tile(b2.astype(jnp.float32), PACK).reshape(1, L)

    apply_dropout = bool(training) and p > 0.0
    grid = (P_pad // TILE_P,)

    tile_spec = pl.BlockSpec((TILE_P, L), lambda i: (i, 0))
    in_specs = [
        tile_spec,                                   # x (packed)
        pl.BlockSpec((L, LH), lambda i: (0, 0)),     # w1 (VMEM-resident)
        pl.BlockSpec((1, LH), lambda i: (0, 0)),     # b1
        pl.BlockSpec((LH, L), lambda i: (0, 0)),     # w2
        pl.BlockSpec((1, L), lambda i: (0, 0)),      # b2
    ]
    inputs = [x_p, w1_bd, b1_bd, w2_bd, b2_bd]

    keep_threshold = 0
    inv_keep = 1.0
    if apply_dropout:
        if key is None:
            key = jax.random.PRNGKey(0)
        bits = jax.random.bits(key, (P_pad, L), dtype=jnp.uint32)
        in_specs.append(pl.BlockSpec((TILE_P, L), lambda i: (i, 0)))
        inputs.append(bits)
        keep_threshold = min(int(p * (2 ** 32)), 2 ** 32 - 1)
        inv_keep = 1.0 / (1.0 - p)

    kernel = functools.partial(
        _ffn_kernel,
        keep_threshold=keep_threshold,
        inv_keep=inv_keep,
        apply_dropout=apply_dropout,
        compute_dtype=compute_dtype,
    )

    itemsize = jnp.dtype(compute_dtype).itemsize
    flops = 4 * P_pad * L * LH                       # two matmuls, 2*P*K*N each
    bytes_accessed = (x_p.size * itemsize            # activations in
                      + w1_bd.size * itemsize + w2_bd.size * itemsize
                      + b1_bd.size * 4 + b2_bd.size * 4
                      + P_pad * L * 4                # f32 output
                      + (P_pad * L * 4 if apply_dropout else 0))

    out_p = pl.pallas_call(
        kernel,
        out_shape=jax.ShapeDtypeStruct((P_pad, L), jnp.float32),
        grid=grid,
        in_specs=in_specs,
        out_specs=pl.BlockSpec((TILE_P, L), lambda i: (i, 0)),
        compiler_params=pltpu.CompilerParams(
            dimension_semantics=("parallel",),       # shard M-tiles across TCs (v7x)
        ),
        cost_estimate=pl.CostEstimate(
            flops=flops, transcendentals=0, bytes_accessed=bytes_accessed),
    )(*inputs)

    out = out_p.reshape(M_pad, C)[:M]
    return out.reshape(B, T, C)


def init_params(key, n_embed=N_EMBED):
    """Deterministic init mimicking nn.Linear default (uniform +/- 1/sqrt(fan_in)).
    Weights stored as (in_features, out_features): y = x @ W + b."""
    k1, k2, k3, k4 = jax.random.split(key, 4)
    h = 4 * n_embed
    lim1 = 1.0 / jnp.sqrt(n_embed)
    lim2 = 1.0 / jnp.sqrt(h)
    w1 = jax.random.uniform(k1, (n_embed, h), jnp.float32, -lim1, lim1)
    b1 = jax.random.uniform(k2, (h,), jnp.float32, -lim1, lim1)
    w2 = jax.random.uniform(k3, (h, n_embed), jnp.float32, -lim2, lim2)
    b2 = jax.random.uniform(k4, (n_embed,), jnp.float32, -lim2, lim2)
    return w1, b1, w2, b2


if __name__ == "__main__":
    key = jax.random.PRNGKey(0)
    k_x, k_p, k_drop = jax.random.split(key, 3)

    B, T, C = 2, 8, N_EMBED
    x = jax.random.normal(k_x, (B, T, C), dtype=jnp.float32)
    w1, b1, w2, b2 = init_params(k_p, C)

    # training mode (dropout active)
    y = feed_forward(x, w1, b1, w2, b2, key=k_drop, p=DROPOUT_P, training=True)
    y = jax.block_until_ready(y)
    assert y.shape == (B, T, C) and y.dtype == jnp.float32
    assert bool(jnp.all(jnp.isfinite(y)))

    # eval mode vs. a reference with matching bf16 matmul operands / f32 accumulate
    y_eval = jax.block_until_ready(
        feed_forward(x, w1, b1, w2, b2, training=False)).reshape(-1, C)
    x_bf = x.reshape(-1, C).astype(jnp.bfloat16)
    h_ref = jnp.maximum(
        jnp.dot(x_bf, w1.astype(jnp.bfloat16),
                preferred_element_type=jnp.float32) + b1, 0.0)
    y_ref = jnp.dot(h_ref.astype(jnp.bfloat16), w2.astype(jnp.bfloat16),
                    preferred_element_type=jnp.float32) + b2
    assert jnp.allclose(y_eval, y_ref, atol=1e-3, rtol=1e-3)

    # and loosely vs. the pure-f32 PyTorch semantics (bf16 operand rounding only)
    y_f32 = jnp.maximum(x.reshape(-1, C) @ w1 + b1, 0.0) @ w2 + b2
    assert jnp.allclose(y_eval, y_f32, atol=5e-2, rtol=5e-2)

    print("KERNEL_OK")
</pallas_src>

<mosaic_0001>
module attributes {stable_mosaic.version = 11 : i64} {
  func.func @_ffn_kernel(%arg0: i32, %arg1: memref<8x128xbf16, #tpu.memory_space<vmem>>, %arg2: memref<128x512xbf16, #tpu.memory_space<vmem>>, %arg3: memref<1x512xf32, #tpu.memory_space<vmem>>, %arg4: memref<512x128xbf16, #tpu.memory_space<vmem>>, %arg5: memref<1x128xf32, #tpu.memory_space<vmem>>, %arg6: memref<8x128xi32, #tpu.memory_space<vmem>>, %arg7: memref<8x128xf32, #tpu.memory_space<vmem>>) attributes {dimension_semantics = [#tpu.dimension_semantics<parallel>], iteration_bounds = array<i64: 1>, scalar_prefetch = 0 : i64, scratch_operands = 0 : i64, tpu.core_type = #tpu.core_type<tc>, window_params = [{transform_indices = @transform_0, window_bounds = array<i64: 8, 128>}, {pipeline_mode = #tpu.pipeline_mode<synchronous>, transform_indices = @transform_1, window_bounds = array<i64: 128, 512>}, {pipeline_mode = #tpu.pipeline_mode<synchronous>, transform_indices = @transform_2, window_bounds = array<i64: 1, 512>}, {pipeline_mode = #tpu.pipeline_mode<synchronous>, transform_indices = @transform_3, window_bounds = array<i64: 512, 128>}, {pipeline_mode = #tpu.pipeline_mode<synchronous>, transform_indices = @transform_4, window_bounds = array<i64: 1, 128>}, {transform_indices = @transform_5, window_bounds = array<i64: 8, 128>}, {transform_indices = @transform_6, window_bounds = array<i64: 8, 128>}]} {
    %c0 = arith.constant 0 : index
    %c0_0 = arith.constant 0 : index
    %0 = vector.load %arg1[%c0, %c0_0] : memref<8x128xbf16, #tpu.memory_space<vmem>>, vector<8x128xbf16>
    %c0_1 = arith.constant 0 : index
    %c0_2 = arith.constant 0 : index
    %1 = vector.load %arg2[%c0_1, %c0_2] : memref<128x512xbf16, #tpu.memory_space<vmem>>, vector<128x512xbf16>
    %cst = arith.constant dense<0.000000e+00> : vector<8x512xf32>
    %2 = tpu.matmul %0, %1, %cst {dimension_numbers = #tpu.dot_dimension_numbers<[1], [0], [0], [1], [0, 0, 1, 1], [], []>} : vector<8x128xbf16>, vector<128x512xbf16>, vector<8x512xf32> -> vector<8x512xf32>
    %c0_3 = arith.constant 0 : index
    %c0_4 = arith.constant 0 : index
    %3 = vector.load %arg3[%c0_3, %c0_4] : memref<1x512xf32, #tpu.memory_space<vmem>>, vector<1x512xf32>
    %4 = vector.broadcast %3 : vector<1x512xf32> to vector<8x512xf32>
    %5 = arith.addf %2, %4 : vector<8x512xf32>
    %cst_5 = arith.constant 0.000000e+00 : f32
    %6 = vector.broadcast %cst_5 : f32 to vector<8x512xf32>
    %7 = arith.maximumf %5, %6 : vector<8x512xf32>
    %8 = arith.truncf %7 : vector<8x512xf32> to vector<8x512xbf16>
    %c0_6 = arith.constant 0 : index
    %c0_7 = arith.constant 0 : index
    %9 = vector.load %arg4[%c0_6, %c0_7] : memref<512x128xbf16, #tpu.memory_space<vmem>>, vector<512x128xbf16>
    %cst_8 = arith.constant dense<0.000000e+00> : vector<8x128xf32>
    %10 = tpu.matmul %8, %9, %cst_8 {dimension_numbers = #tpu.dot_dimension_numbers<[1], [0], [0], [1], [0, 0, 1, 1], [], []>} : vector<8x512xbf16>, vector<512x128xbf16>, vector<8x128xf32> -> vector<8x128xf32>
    %c0_9 = arith.constant 0 : index
    %c0_10 = arith.constant 0 : index
    %11 = vector.load %arg5[%c0_9, %c0_10] : memref<1x128xf32, #tpu.memory_space<vmem>>, vector<1x128xf32>
    %12 = vector.broadcast %11 : vector<1x128xf32> to vector<8x128xf32>
    %13 = arith.addf %10, %12 : vector<8x128xf32>
    %c0_11 = arith.constant 0 : index
    %c0_12 = arith.constant 0 : index
    %14 = vector.load %arg6[%c0_11, %c0_12] : memref<8x128xi32, #tpu.memory_space<vmem>>, vector<8x128xi32>
    %c858993459_i32 = arith.constant 858993459 : i32
    %15 = vector.broadcast %c858993459_i32 : i32 to vector<8x128xi32>
    %16 = arith.cmpi uge, %14, %15 : vector<8x128xi32>
    %cst_13 = arith.constant 1.250000e+00 : f32
    %17 = vector.broadcast %cst_13 : f32 to vector<8x128xf32>
    %18 = arith.mulf %13, %17 : vector<8x128xf32>
    %cst_14 = arith.constant 0.000000e+00 : f32
    %19 = vector.broadcast %cst_14 : f32 to vector<8x128xf32>
    %20 = arith.select %16, %18, %19 : vector<8x128xi1>, vector<8x128xf32>
    %c0_15 = arith.constant 0 : index
    %c0_16 = arith.constant 0 : index
    %21 = vector.load %arg7[%c0_15, %c0_16] : memref<8x128xf32, #tpu.memory_space<vmem>>, vector<8x128xf32>
    tpu.vector_store %arg7[%c0_15, %c0_16], %20 {strides = array<i32>} : memref<8x128xf32, #tpu.memory_space<vmem>>, vector<8x128xf32>,
    return
  }
  func.func @transform_0(%arg0: i32) -> (i32, i32) {
    %c0_i32 = arith.constant 0 : i32
    %c0_i32_0 = arith.constant 0 : i32
    return %arg0, %c0_i32 : i32, i32
  }
  func.func @transform_1(%arg0: i32) -> (i32, i32) {
    %c0_i32 = arith.constant 0 : i32
    %c0_i32_0 = arith.constant 0 : i32
    %c0_i32_1 = arith.constant 0 : i32
    return %c0_i32, %c0_i32_0 : i32, i32
  }
  func.func @transform_2(%arg0: i32) -> (i32, i32) {
    %c0_i32 = arith.constant 0 : i32
    %c0_i32_0 = arith.constant 0 : i32
    %c0_i32_1 = arith.constant 0 : i32
    return %c0_i32, %c0_i32_0 : i32, i32
  }
  func.func @transform_3(%arg0: i32) -> (i32, i32) {
    %c0_i32 = arith.constant 0 : i32
    %c0_i32_0 = arith.constant 0 : i32
    %c0_i32_1 = arith.constant 0 : i32
    return %c0_i32, %c0_i32_0 : i32, i32
  }
  func.func @transform_4(%arg0: i32) -> (i32, i32) {
    %c0_i32 = arith.constant 0 : i32
    %c0_i32_0 = arith.constant 0 : i32
    %c0_i32_1 = arith.constant 0 : i32
    return %c0_i32, %c0_i32_0 : i32, i32
  }
  func.func @transform_5(%arg0: i32) -> (i32, i32) {
    %c0_i32 = arith.constant 0 : i32
    %c0_i32_0 = arith.constant 0 : i32
    return %arg0, %c0_i32 : i32, i32
  }
  func.func @transform_6(%arg0: i32) -> (i32, i32) {
    %c0_i32 = arith.constant 0 : i32
    %c0_i32_0 = arith.constant 0 : i32
    return %arg0, %c0_i32 : i32, i32
  }
}

</mosaic_0001>

<bundles_post_ra>
// kernel: tpu_custom_call.1
= control target key start
LH: loop header
LB: loop body
LE: loop exit
PB: predicated region body
PF: predicated region fallthrough
CT: control target
= control target key end

     0   :  { %11 = vsyncpa [#allocation3], 0  ;;  %s1119_s0 = inlined_call_operand.hbm [shape: bf16[8,128], index: 0, kind: input, shape index: {}]   ;;  %s1120_s1 = inlined_call_operand.hbm [shape: bf16[128,512], index: 1, kind: input, shape index: {}]   ;;  %s1121_s2 = inlined_call_operand.hbm [shape: f32[1,512], index: 2, kind: input, shape index: {}]   ;;  %s1122_s3 = inlined_call_operand.hbm [shape: bf16[512,128], index: 3, kind: input, shape index: {}]   ;;  %s1123_s4 = inlined_call_operand.vmem [shape: f32[1,128], index: 4, kind: input, shape index: {}]   ;;  %s1124_s5 = inlined_call_operand.vmem [shape: u32[8,128], index: 5, kind: input, shape index: {}]   ;;  %s1125_s6 = inlined_call_operand.hbm [shape: f32[8,128], index: 6, kind: output, shape index: {}]  }
   0x1   :  { %12 = vsyncpa [#allocation6], 0 }
   0x2   :  { %13 = vsyncpa [#allocation9], 0 }
   0x3   :  { %14 = vsyncpa [#allocation4], 0  ;;  %s1053_s21 = smov [#allocation5]  }
   0x4   :  { %s30_s22 = sshll.u32 %s1053_s21, 4  ;;  %s31_s22 = int_to_ptr.vmem [resolvable:$true] %s30_s22 }
   0x5   :  { %s953_s23 = scalar_lea.vmem %s31_s22, 4096  ;;  %p958_p1 = scmp.lt.s32.totalorder %s31_s22, %s31_s22 }
   0x6   :  { %p954_p0 = scmp.ne.s32.totalorder %s31_s22, %s953_s23  ;;  %p959_p2 = scmp.lt.s32.totalorder %s953_s23, %s953_s23 }
   0x8   :  { %p960_p3 = por %p959_p2, %p958_p1 }
   0xa   :  { %p961_p4 = pnand %p960_p3, %p954_p0 }
   0xc   :  { %964 = shalt.err (!%p961_p4)
}
   0xd   :  { %s1054_s24 = smov 256   ;;  %s1055_s25 = smov 16  }
   0xe   :  { %36 = dma.hbm_to_vmem [thread:$0]  %s1120_s1, 4096, %s31_s22, [#allocation6], %s1054_s24, %s1054_s24, %s1055_s25  }
   0xf   :  { %s1056_s28 = smov [#allocation2]   ;;  %s1057_s30 = smov [#allocation7]  }
  0x10   :  { %s21_s29 = sshll.u32 %s1056_s28, 4  ;;  %s43_s7 = sshll.u32 %s1057_s30, 4  ;;  %s22_s29 = int_to_ptr.vmem [resolvable:$true] %s21_s29  ;;  %s44_s7 = int_to_ptr.vmem [resolvable:$true] %s43_s7 }
  0x11   :  { %s973_s8 = scalar_lea.vmem %s22_s29, 64  ;;  %p978_p6 = scmp.lt.s32.totalorder %s22_s29, %s22_s29 }
  0x12   :  { %p974_p5 = scmp.ne.s32.totalorder %s22_s29, %s973_s8  ;;  %p979_p7 = scmp.lt.s32.totalorder %s973_s8, %s973_s8 }
  0x14   :  { %p980_p8 = por %p979_p7, %p978_p6 }
  0x16   :  { %p981_p9 = pnand %p980_p8, %p974_p5 }
  0x18   :  { %984 = shalt.err (!%p981_p9)
}
  0x19   :  { %24 = dma.hbm_to_vmem [thread:$0]  %s1119_s0, 64, %s22_s29, [#allocation3]  }
  0x1a   :  { %s993_s11 = scalar_lea.vmem %s44_s7, 64  ;;  %p998_p11 = scmp.lt.s32.totalorder %s44_s7, %s44_s7 }
  0x1b   :  { %p994_p10 = scmp.ne.s32.totalorder %s44_s7, %s993_s11  ;;  %p999_p12 = scmp.lt.s32.totalorder %s993_s11, %s993_s11 }
  0x1d   :  { %p1000_p13 = por %p999_p12, %p998_p11 }
  0x1f   :  { %p1001_p0 = pnand %p1000_p13, %p994_p10 }
  0x21   :  { %1004 = shalt.err (!%p1001_p0)
}
  0x22   :  { %46 = dma.hbm_to_vmem [thread:$0]  %s1121_s2, 64, %s44_s7, [#allocation6]  }
  0x23   :  { %s1058_s13 = smov [#allocation8]  }
  0x24   :  { %s52_s14 = sshll.u32 %s1058_s13, 4  ;;  %s53_s14 = int_to_ptr.vmem [resolvable:$true] %s52_s14 }
  0x25   :  { %s1013_s15 = scalar_lea.vmem %s53_s14, 4096  ;;  %p1018_p2 = scmp.lt.s32.totalorder %s53_s14, %s53_s14 }
  0x26   :  { %p1014_p1 = scmp.ne.s32.totalorder %s53_s14, %s1013_s15  ;;  %p1019_p3 = scmp.lt.s32.totalorder %s1013_s15, %s1013_s15 }
  0x28   :  { %p1020_p4 = por %p1019_p3, %p1018_p2 }
  0x2a   :  { %p1021_p5 = pnand %p1020_p4, %p1014_p1 }
  0x2c   :  { %1024 = shalt.err (!%p1021_p5)
}
  0x2d   :  { %s1059_s0 = smov 64   ;;  %s1060_s16 = smov 4  }
  0x2e   :  { %58 = dma.hbm_to_vmem [thread:$0]  %s1122_s3, 4096, %s53_s14, [#allocation9], %s1059_s0, %s1059_s0, %s1060_s16  }
  0x2f   :  { %1045 = dma.done.wait [#allocation3], 64  }
  0x30   :  { %1046 = vsyncadd [#allocation3], 4294967232 }
  0x31   :  { %1047 = dma.done.wait [#allocation6], 4160  }
  0x32   :  { %1048 = vsyncadd [#allocation6], 4294963136 }
  0x33   :  { %1049 = dma.done.wait [#allocation9], 4096  }
  0x34   :  { %1050 = vsyncadd [#allocation9], 4294963200  ;;  %v1061_v0 = vmov 0   ;;  %v865_v1 = vld [vmem:[#allocation5 + $0xe4] ss:$16 sps:$4 sm:$0xff]   ;;  %v913_v33 = vld [vmem:[#allocation8 + $0x78] sm:$0xff]  }
  0x35   :  { %323 = vmatprep.mubr.bf16.mxu0 %v1061_v0  ;;  %364 = vmatprep.mubr.bf16.mxu1 %v1061_v0  ;;  %v867_v2 = vld [vmem:[#allocation5 + $0xec] ss:$16 sps:$4 sm:$0xff]   ;;  %v869_v3 = vld [vmem:[#allocation5 + $0xe0] ss:$16 sps:$4 sm:$0xff]   ;;  %v870_v4 = vld [vmem:[#allocation5 + $0xe8] ss:$16 sps:$4 sm:$0xff]  }
  0x36   :  { %291 = vmatprep.subr.bf16.mxu0 %v865_v1  ;;  %332 = vmatprep.subr.bf16.mxu1 %v867_v2  ;;  %v871_v5 = vld [vmem:[#allocation5 + $0xc4] ss:$16 sps:$4 sm:$0xff]   ;;  %v873_v6 = vld [vmem:[#allocation5 + $0xcc] ss:$16 sps:$4 sm:$0xff]   ;;  %v875_v7 = vld [vmem:[#allocation5 + $0xc0] ss:$16 sps:$4 sm:$0xff]   ;;  %v111_v2 = vlaneseq }
  0x37   :  { %292 = vmatpush1.bf16.msra.mxu0 %v869_v3  ;;  %333 = vmatpush1.bf16.msra.mxu1 %v870_v4  ;;  %v876_v8 = vld [vmem:[#allocation5 + $0xc8] ss:$16 sps:$4 sm:$0xff]   ;;  %v877_v9 = vld [vmem:[#allocation5 + $0xa4] ss:$16 sps:$4 sm:$0xff]   ;;  %v879_v10 = vld [vmem:[#allocation5 + $0xac] ss:$16 sps:$4 sm:$0xff]  }
  0x38   :  { %293 = vmatprep.subr.bf16.mxu0 %v871_v5  ;;  %334 = vmatprep.subr.bf16.mxu1 %v873_v6  ;;  %v881_v11 = vld [vmem:[#allocation5 + $0xa0] ss:$16 sps:$4 sm:$0xff]   ;;  %v882_v12 = vld [vmem:[#allocation5 + $0xa8] ss:$16 sps:$4 sm:$0xff]   ;;  %v883_v13 = vld [vmem:[#allocation5 + $0x84] ss:$16 sps:$4 sm:$0xff]  }
  0x39   :  { %v885_v14 = vld [vmem:[#allocation5 + $0x8c] ss:$16 sps:$4 sm:$0xff]   ;;  %v887_v15 = vld [vmem:[#allocation5 + $0x80] ss:$16 sps:$4 sm:$0xff]   ;;  %v888_v16 = vld [vmem:[#allocation5 + $0x88] ss:$16 sps:$4 sm:$0xff]  }
  0x3a   :  { %v889_v17 = vld [vmem:[#allocation5 + $0x64] ss:$16 sps:$4 sm:$0xff]   ;;  %v891_v18 = vld [vmem:[#allocation5 + $0x6c] ss:$16 sps:$4 sm:$0xff]   ;;  %v893_v19 = vld [vmem:[#allocation5 + $0x60] ss:$16 sps:$4 sm:$0xff]  }
  0x3b   :  { %294 = vmatpush1.bf16.msra.mxu0 %v875_v7  ;;  %335 = vmatpush1.bf16.msra.mxu1 %v876_v8  ;;  %v894_v20 = vld [vmem:[#allocation5 + $0x68] ss:$16 sps:$4 sm:$0xff]   ;;  %v895_v21 = vld [vmem:[#allocation5 + $0x44] ss:$16 sps:$4 sm:$0xff]   ;;  %v897_v22 = vld [vmem:[#allocation5 + $0x4c] ss:$16 sps:$4 sm:$0xff]  }
  0x3c   :  { %295 = vmatprep.subr.bf16.mxu0 %v877_v9  ;;  %336 = vmatprep.subr.bf16.mxu1 %v879_v10  ;;  %v899_v23 = vld [vmem:[#allocation5 + $0x40] ss:$16 sps:$4 sm:$0xff]   ;;  %v900_v24 = vld [vmem:[#allocation5 + $0x48] ss:$16 sps:$4 sm:$0xff]   ;;  %v901_v25 = vld [vmem:[#allocation5 + $0x24] ss:$16 sps:$4 sm:$0xff]  }
  0x3d   :  { %v903_v26 = vld [vmem:[#allocation5 + $0x2c] ss:$16 sps:$4 sm:$0xff]   ;;  %v905_v27 = vld [vmem:[#allocation5 + $0x20] ss:$16 sps:$4 sm:$0xff]   ;;  %v906_v28 = vld [vmem:[#allocation5 + $0x28] ss:$16 sps:$4 sm:$0xff]  }
  0x3e   :  { %v907_v29 = vld [vmem:[#allocation5 + $0x4] ss:$16 sps:$4 sm:$0xff]   ;;  %v909_v30 = vld [vmem:[#allocation5 + $0xc] ss:$16 sps:$4 sm:$0xff]   ;;  %v911_v31 = vld [vmem:[#allocation5] ss:$16 sps:$4 sm:$0xff]  }
  0x3f   :  { %296 = vmatpush1.bf16.msra.mxu0 %v881_v11  ;;  %337 = vmatpush1.bf16.msra.mxu1 %v882_v12  ;;  %v912_v32 = vld [vmem:[#allocation5 + $0x8] ss:$16 sps:$4 sm:$0xff]   ;;  %v914_v34 = vld [vmem:[#allocation8 + $0xf8] sm:$0xff]   ;;  %v921_v42 = vld [vmem:[#allocation8 + $0x68] sm:$0xff]   ;;  %v112_v3 = vshrl.u32 %v111_v2, 7  ;;  %s1062_s21 = smov [#allocation10]  }
  0x40   :  { %297 = vmatprep.subr.bf16.mxu0 %v883_v13  ;;  %338 = vmatprep.subr.bf16.mxu1 %v885_v14  ;;  %v76_v35 = vld [vmem:[#allocation2] sm:$0xf]  ;;  %v917_v38 = vld [vmem:[#allocation8 + $0x70] sm:$0xff]   ;;  %v922_v43 = vld [vmem:[#allocation8 + $0xe8] sm:$0xff]   ;;  %s735_s22 = sshll.u32 %s1062_s21, 4  ;;  %s736_s22 = int_to_ptr.vmem [resolvable:$true] %s735_s22 }
  0x41   :  { %v915_v36 = vld [vmem:[#allocation8 + $0x38] sm:$0xff]   ;;  %v918_v39 = vld [vmem:[#allocation8 + $0xf0] sm:$0xff]   ;;  %v923_v44 = vld [vmem:[#allocation8 + $0x28] sm:$0xff]   ;;  %v113_v4 = vsub.s32 0, %v112_v3  ;;  %v121_v5 = vsub.s32 2, %v112_v3  ;;  %v117_v7 = vsub.s32 1, %v112_v3  ;;  %p1030_p7 = scmp.lt.s32.totalorder %s736_s22, %s736_s22 }
  0x42   :  { %v916_v37 = vld [vmem:[#allocation8 + $0xb8] sm:$0xff]   ;;  %v919_v40 = vld [vmem:[#allocation8 + $0x30] sm:$0xff]   ;;  %v924_v45 = vld [vmem:[#allocation8 + $0xa8] sm:$0xff]   ;;  %v125_v8 = vsub.s32 3, %v112_v3 }
  0x43   :  { %298 = vmatpush1.bf16.msra.mxu0 %v887_v15  ;;  %339 = vmatpush1.bf16.msra.mxu1 %v888_v16  ;;  %v920_v41 = vld [vmem:[#allocation8 + $0xb0] sm:$0xff]   ;;  %v925_v46 = vld [vmem:[#allocation8 + $0x60] sm:$0xff]   ;;  %v929_v50 = vld [vmem:[#allocation8 + $0x58] sm:$0xff]  }
  0x44   :  { %299 = vmatprep.subr.bf16.mxu0 %v889_v17  ;;  %340 = vmatprep.subr.bf16.mxu1 %v891_v18  ;;  %v926_v47 = vld [vmem:[#allocation8 + $0xe0] sm:$0xff]   ;;  %v930_v51 = vld [vmem:[#allocation8 + $0xd8] sm:$0xff]   ;;  %v933_v54 = vld [vmem:[#allocation8 + $0x50] sm:$0xff]  }
  0x45   :  { %v927_v48 = vld [vmem:[#allocation8 + $0x20] sm:$0xff]   ;;  %v931_v52 = vld [vmem:[#allocation8 + $0x18] sm:$0xff]   ;;  %v934_v55 = vld [vmem:[#allocation8 + $0xd0] sm:$0xff]  }
  0x46   :  { %v928_v49 = vld [vmem:[#allocation8 + $0xa0] sm:$0xff]   ;;  %v932_v53 = vld [vmem:[#allocation8 + $0x98] sm:$0xff]   ;;  %v935_v56 = vld [vmem:[#allocation8 + $0x10] sm:$0xff]  }
  0x47   :  { %300 = vmatpush1.bf16.msra.mxu0 %v893_v19  ;;  %341 = vmatpush1.bf16.msra.mxu1 %v894_v20  ;;  %v936_v57 = vld [vmem:[#allocation8 + $0x90] sm:$0xff]   ;;  %v937_v58 = vld [vmem:[#allocation8 + $0x48] sm:$0xff]   ;;  %v941_v62 = vld [vmem:[#allocation8 + $0x40] sm:$0xff]  }
  0x48   :  { %301 = vmatprep.subr.bf16.mxu0 %v895_v21  ;;  %342 = vmatprep.subr.bf16.mxu1 %v897_v22  ;;  %v938_v59 = vld [vmem:[#allocation8 + $0xc8] sm:$0xff]   ;;  %v942_v63 = vld [vmem:[#allocation8 + $0xc0] sm:$0xff]   ;;  %v109_v6 = vld [vmem:[#allocation7] sm:$0xf] }
  0x49   :  { %v939_v60 = vld [vmem:[#allocation8 + $0x8] sm:$0xff]   ;;  %v943_v0 = vld [vmem:[#allocation8] sm:$0xff]   ;;  %v114_v9 = vrot.slane %v109_v6, %v113_v4  ;;  %v122_v10 = vrot.slane %v109_v6, %v121_v5  ;;  %v118_v11 = vrot.slane %v109_v6, %v117_v7  ;;  %v126_v12 = vrot.slane %v109_v6, %v125_v8 }
  0x4a   :  { %v940_v61 = vld [vmem:[#allocation8 + $0x88] sm:$0xff]   ;;  %v944_v1 = vld [vmem:[#allocation8 + $0x80] sm:$0xff]  }
  0x4b   :  { %302 = vmatpush1.bf16.msra.mxu0 %v899_v23  ;;  %343 = vmatpush1.bf16.msra.mxu1 %v900_v24 }
  0x4c   :  { %303 = vmatprep.subr.bf16.mxu0 %v901_v25  ;;  %344 = vmatprep.subr.bf16.mxu1 %v903_v26 }
  0x4f   :  { %304 = vmatpush1.bf16.msra.mxu0 %v905_v27  ;;  %345 = vmatpush1.bf16.msra.mxu1 %v906_v28 }
  0x50   :  { %305 = vmatprep.subr.bf16.mxu0 %v907_v29  ;;  %346 = vmatprep.subr.bf16.mxu1 %v909_v30 }
  0x53   :  { %306 = vmatpush1.bf16.msra.mxu0 %v911_v31  ;;  %347 = vmatpush1.bf16.msra.mxu1 %v912_v32 }
  0x54   :  { %811 = vmatprep.subr.bf16.mxu0 %v913_v33  ;;  %833 = vmatprep.subr.bf16.mxu1 %v914_v34 }
  0x56   :  { %324 = vmatmul.mubr.bf16.vlgmr.msra.gmra.mxu0 %v76_v35  ;;  %365 = vmatmul.mubr.bf16.vlgmr.msra.gmra.mxu1 %v76_v35  ;;  %v778_v35 = vld [vmem:[%s1123_s4] ss:$0 sm:$0xff]  ;;  %s1025_s4 = scalar_lea.vmem %s736_s22, 128 }
  0x57   :  { %812 = vmatpush3.bf16.msra.mxu0 %v915_v36  ;;  %834 = vmatpush3.bf16.msra.mxu1 %v916_v37  ;;  %p1026_p6 = scmp.ne.s32.totalorder %s736_s22, %s1025_s4  ;;  %p1031_p8 = scmp.lt.s32.totalorder %s1025_s4, %s1025_s4 }
  0x58   :  { %813 = vmatprep.subr.bf16.mxu0 %v917_v38  ;;  %835 = vmatprep.subr.bf16.mxu1 %v918_v39 }
  0x59   :  { %p1032_p9 = por %p1031_p8, %p1030_p7 }
  0x5b   :  { %814 = vmatpush3.bf16.msra.mxu0 %v919_v40  ;;  %836 = vmatpush3.bf16.msra.mxu1 %v920_v41  ;;  %p1033_p10 = pnand %p1032_p9, %p1026_p6 }
  0x5c   :  { %815 = vmatprep.subr.bf16.mxu0 %v921_v42  ;;  %837 = vmatprep.subr.bf16.mxu1 %v922_v43  ;;  %v724_v43 = vld [vmem:[%s1124_s5] sm:$0xff] }
  0x5d   :  { %vm725_vm0 = vcmp.ge.u32.totalorder %v724_v43, 858993459 }
  0x5f   :  { %816 = vmatpush3.bf16.msra.mxu0 %v923_v44  ;;  %838 = vmatpush3.bf16.msra.mxu1 %v924_v45 }
  0x60   :  { %817 = vmatprep.subr.bf16.mxu0 %v925_v46  ;;  %839 = vmatprep.subr.bf16.mxu1 %v926_v47 }
  0x63   :  { %818 = vmatpush3.bf16.msra.mxu0 %v927_v48  ;;  %840 = vmatpush3.bf16.msra.mxu1 %v928_v49 }
  0x64   :  { %819 = vmatprep.subr.bf16.mxu0 %v929_v50  ;;  %841 = vmatprep.subr.bf16.mxu1 %v930_v51 }
  0x67   :  { %820 = vmatpush3.bf16.msra.mxu0 %v931_v52  ;;  %842 = vmatpush3.bf16.msra.mxu1 %v932_v53 }
  0x68   :  { %821 = vmatprep.subr.bf16.mxu0 %v933_v54  ;;  %843 = vmatprep.subr.bf16.mxu1 %v934_v55 }
  0x6b   :  { %822 = vmatpush3.bf16.msra.mxu0 %v935_v56  ;;  %844 = vmatpush3.bf16.msra.mxu1 %v936_v57 }
  0x6c   :  { %823 = vmatprep.subr.bf16.mxu0 %v937_v58  ;;  %845 = vmatprep.subr.bf16.mxu1 %v938_v59 }
  0x6f   :  { %824 = vmatpush3.bf16.msra.mxu0 %v939_v60  ;;  %846 = vmatpush3.bf16.msra.mxu1 %v940_v61 }
  0x70   :  { %825 = vmatprep.subr.bf16.mxu0 %v941_v62  ;;  %847 = vmatprep.subr.bf16.mxu1 %v942_v63 }
  0x73   :  { %826 = vmatpush3.bf16.msra.mxu0 %v943_v0  ;;  %848 = vmatpush3.bf16.msra.mxu1 %v944_v1 }
 0x116   :  { %v325_v13 = vpop.f32.mrf.mxu0  ;;  %v366_v14 = vpop.f32.mrf.mxu1 }
 0x117   :  { %v326_v15 = vadd.f32 %v325_v13, %v114_v9  ;;  %v367_v16 = vadd.f32 %v366_v14, %v122_v10 }
 0x118   :  { %v327_v17 = vpop.f32.mrf.mxu0  ;;  %v368_v18 = vpop.f32.mrf.mxu1 }
 0x119   :  { %v375_v19 = vmax.f32 %v367_v16, 0.0  ;;  %v328_v20 = vadd.f32 %v327_v17, %v118_v11  ;;  %v369_v21 = vadd.f32 %v368_v18, %v126_v12  ;;  %v373_v22 = vmax.f32 %v326_v15, 0.0 }
 0x11a   :  { %v329_v23 = vpop.f32.mrf.mxu0  ;;  %v370_v24 = vpop.f32.mrf.mxu1 }
 0x11b   :  { %v374_v25 = vmax.f32 %v328_v20, 0.0  ;;  %v376_v26 = vmax.f32 %v369_v21, 0.0  ;;  %v379_v27 = vpack.c.bf16 %v375_v19, %v375_v19  ;;  %v377_v32 = vpack.c.bf16 %v373_v22, %v373_v22 }
 0x11c   :  { %v330_v28 = vpop.f32.mrf.mxu0  ;;  %v371_v29 = vpop.f32.mrf.mxu1 }
 0x11d   :  { %v378_v30 = vpack.c.bf16 %v374_v25, %v374_v25  ;;  %v380_v31 = vpack.c.bf16 %v376_v26, %v376_v26 }
 0x11f   :  { %676 = vmatprep.mubr.bf16.mxu0 %v378_v30  ;;  %716 = vmatprep.mubr.bf16.mxu1 %v380_v31 }
 0x120   :  { %677 = vmatmul.mubr.bf16.vlgmr.msra.gmra.mxu0 %v377_v32  ;;  %717 = vmatmul.mubr.bf16.vlgmr.msra.gmra.mxu1 %v379_v27 }
 0x1e0   :  { %v827_v33 = vpop.f32.mrf.mxu0  ;;  %v849_v34 = vpop.f32.mrf.mxu1 }
 0x1e2   :  { %v828_v36 = vpop.f32.mrf.mxu0  ;;  %v850_v37 = vpop.f32.mrf.mxu1 }
 0x1e3   :  { %v829_v38 = vadd.f32 %v828_v36, %v827_v33  ;;  %v851_v42 = vadd.f32 %v850_v37, %v849_v34 }
 0x1e4   :  { %v830_v39 = vpop.f32.mrf.mxu0  ;;  %v852_v40 = vpop.f32.mrf.mxu1 }
 0x1e5   :  { %v679_v41 = vadd.f32 %v829_v38, %v778_v35 }
 0x1e6   :  { %v831_v44 = vpop.f32.mrf.mxu0  ;;  %v853_v45 = vpop.f32.mrf.mxu1 }
 0x1e7   :  { %v719_v46 = vadd.f32 %v851_v42, %v679_v41 }
 0x1e9   :  { %v726_v47 = vmul.f32 1.25, %v719_v46 }
 0x1eb   :  { %v727_v48 = vsel %vm725_vm0, %v726_v47, 0.0 }
 0x1ec   :  { %728 = vst [vmem:[#allocation10] sm:$0xff] %v727_v48 }
 0x1ed   :  { %1036 = shalt.err (!%p1033_p10)
}
 0x1ee   :  { %738 = dma.vmem_to_hbm [thread:$0]  %s736_s22, 128, %s1125_s6, [#allocation4]  }
 0x1ef   :  { %1051 = dma.done.wait [#allocation4], 128  }
 0x1f0   :  { %1052 = vsyncadd [#allocation4], 4294967168 }
 0x1f1   :  { %742 = vsyncpa [#allocation3], 1 }
 0x1f2   :  { %743 = vsyncpa [#allocation6], 1 }
 0x1f3   :  { %744 = vsyncpa [#allocation9], 1 }
 0x1f4   :  { %745 = vsyncpa [#allocation4], 1 }

</bundles_post_ra>
